<compile_context>
chip_gen: v6e
topology: v6e:2x2x1
jax: 0.10.0
libtpu: 0.0.40
codegen_flags: <defaults>
</compile_context>

<pallas_src>
import jax
import jax.numpy as jnp
from jax.experimental import pallas as pl
from jax.experimental.pallas import tpu as pltpu

B, D0, D1, D2, D3 = 8, 1000, 256, 128, 2
NPAD = 128          # lane-dense padded width for the fc3 / log_softmax output
EPS = 1e-5

# fc1 tiling.  At real sizes (D0=401872, D1=2048) use TK=1024-2048 and
# TN1 = D1 // 2 so each v7x TensorCore owns half of fc1's output columns.
TK = 512            # fc1 contraction tile (multiple of 128)
TN1 = 128           # fc1 output-column tile (D1 % TN1 == 0)


# --------------------------------------------------------------------------
# Kernel 1: h = relu(fc1(bn1(x)))  — the only bandwidth-heavy part.
# Grid = (j: fc1 output-column blocks [parallel], k: contraction blocks
# [arbitrary]); the output block is resident across k and used as the fp32
# accumulator (no extra scratch).
# --------------------------------------------------------------------------
def fc1_kernel(x_ref, g1_ref, be1_ref, w1_ref, b1_ref, h_ref):
    k = pl.program_id(1)

    @pl.when(k == 0)
    def _():
        h_ref[...] = jnp.zeros_like(h_ref)

    # BN1 folded affine on this K block (stats are over the batch axis, so
    # per-feature mean/var are exact for any K tiling).  Padded columns have
    # x == 0, gamma == 0, beta == 0  =>  xn == 0 there.
    x = x_ref[...]                                            # (B, TK) fp32
    mu = jnp.mean(x, axis=0, keepdims=True)
    var = jnp.maximum(jnp.mean(x * x, axis=0, keepdims=True) - mu * mu, 0.0)
    s = g1_ref[...] * jax.lax.rsqrt(var + EPS)
    t = be1_ref[...] - mu * s
    xn = x * s + t                                            # fp32

    # Partial fc1: bf16 operands, fp32 accumulation on the MXU.
    h_ref[...] += jnp.dot(xn.astype(jnp.bfloat16), w1_ref[...],
                          preferred_element_type=jnp.float32)

    @pl.when(k == pl.num_programs(1) - 1)
    def _():
        h_ref[...] = jnp.maximum(h_ref[...] + b1_ref[...], 0.0)


# --------------------------------------------------------------------------
# Kernel 2 (grid-less, everything fetched once into VMEM):
#   h2 = relu(fc2(bn2(h))); out = log_softmax(fc3(bn3(h2)))  (padded to 128)
# --------------------------------------------------------------------------
def tail_kernel(h_ref, g2_ref, be2_ref, w2_ref, b2_ref,
                g3_ref, be3_ref, w3_ref, b3_ref, o_ref):
    h = h_ref[...]                                            # (B, D1) fp32

    mu2 = jnp.mean(h, axis=0, keepdims=True)
    var2 = jnp.maximum(jnp.mean(h * h, axis=0, keepdims=True) - mu2 * mu2, 0.0)
    s2 = g2_ref[...] * jax.lax.rsqrt(var2 + EPS)
    t2 = be2_ref[...] - mu2 * s2
    h2 = jnp.dot((h * s2 + t2).astype(jnp.bfloat16), w2_ref[...],
                 preferred_element_type=jnp.float32) + b2_ref[...]
    h2 = jnp.maximum(h2, 0.0)                                 # (B, D2) fp32

    mu3 = jnp.mean(h2, axis=0, keepdims=True)
    var3 = jnp.maximum(jnp.mean(h2 * h2, axis=0, keepdims=True) - mu3 * mu3, 0.0)
    s3 = g3_ref[...] * jax.lax.rsqrt(var3 + EPS)
    t3 = be3_ref[...] - mu3 * s3
    logits = jnp.dot((h2 * s3 + t3).astype(jnp.bfloat16), w3_ref[...],
                     preferred_element_type=jnp.float32) + b3_ref[...]
    # Padded columns carry a -1e30 bias -> contribute ~0 to the softmax sum.
    m = jnp.max(logits, axis=-1, keepdims=True)
    lse = m + jnp.log(jnp.sum(jnp.exp(logits - m), axis=-1, keepdims=True))
    o_ref[...] = logits - lse                                 # (B, NPAD)


def _fc1_vmem_bytes():
    """Double-buffered streamed blocks + resident fp32 output block."""
    streamed = (B * TK * 4          # x block
                + 2 * TK * 4        # gamma1 / beta1 blocks
                + TK * TN1 * 2      # w1 block (bf16) — dominant
                + TN1 * 4)          # b1 block
    return 2 * streamed + 2 * B * TN1 * 4


def net_forward(x, params):
    g1, be1, w1, b1, g2, be2, w2, b2, g3, be3, w3, b3 = params

    # --- pad the fc1 contraction dim to a TK multiple (BN/matmul-safe) ---
    nk = pl.cdiv(D0, TK)
    d0p = nk * TK
    if d0p != D0:
        pad = d0p - D0
        x = jnp.pad(x, ((0, 0), (0, pad)))
        g1 = jnp.pad(g1, ((0, 0), (0, pad)))
        be1 = jnp.pad(be1, ((0, 0), (0, pad)))
        w1 = jnp.pad(w1, ((0, pad), (0, 0)))

    nj = D1 // TN1

    # vmem limit derived from the block shapes (with headroom), capped at
    # 48 MiB so the same configuration is safe on v7x's 64 MiB VMEM; on
    # v5e/v6e a larger TK could raise this toward ~100 MiB.
    vmem_limit = min(max(4 * _fc1_vmem_bytes(), 32 * 1024 * 1024),
                     48 * 1024 * 1024)

    fc1_flops = 2 * B * d0p * D1
    fc1_bytes = (nj * B * d0p * 4            # x re-read once per j block
                 + d0p * D1 * 2              # w1 (bf16) — dominant stream
                 + 2 * d0p * 4 + D1 * 4      # bn1 params + b1
                 + B * D1 * 4)               # h writeback

    h = pl.pallas_call(
        fc1_kernel,
        out_shape=jax.ShapeDtypeStruct((B, D1), jnp.float32),
        grid_spec=pltpu.PrefetchScalarGridSpec(
            num_scalar_prefetch=0,
            grid=(nj, nk),
            in_specs=[
                pl.BlockSpec((B, TK), lambda j, k: (0, k)),    # x
                pl.BlockSpec((1, TK), lambda j, k: (0, k)),    # gamma1
                pl.BlockSpec((1, TK), lambda j, k: (0, k)),    # beta1
                pl.BlockSpec((TK, TN1), lambda j, k: (k, j)),  # w1
                pl.BlockSpec((1, TN1), lambda j, k: (0, j)),   # b1
            ],
            out_specs=pl.BlockSpec((B, TN1), lambda j, k: (0, j)),
        ),
        compiler_params=pltpu.CompilerParams(
            dimension_semantics=("parallel", "arbitrary"),
            vmem_limit_bytes=vmem_limit),
        cost_estimate=pl.CostEstimate(
            flops=fc1_flops, transcendentals=d0p,
            bytes_accessed=fc1_bytes),
    )(x, g1, be1, w1, b1)

    # --- tiny tail: pad fc3 to a lane-dense 128-wide output ---
    w3p = jnp.zeros((D2, NPAD), jnp.bfloat16).at[:, :D3].set(w3)
    b3p = jnp.full((1, NPAD), -1e30, jnp.float32).at[:, :D3].set(b3)

    out_pad = pl.pallas_call(
        tail_kernel,
        out_shape=jax.ShapeDtypeStruct((B, NPAD), jnp.float32),
        cost_estimate=pl.CostEstimate(
            flops=2 * B * (D1 * D2 + D2 * NPAD),
            transcendentals=D1 + D2 + 2 * B * NPAD,
            bytes_accessed=(B * D1 * 4 + D1 * D2 * 2 + D2 * NPAD * 2
                            + (D1 + D2) * 8 + (D2 + NPAD) * 4 + B * NPAD * 4)),
    )(h, g2, be2, w2, b2, g3, be3, w3p, b3p)

    return out_pad[:, :D3]


def init_params(key):
    """PyTorch-like init (BN: gamma=1, beta=0; Linear: U(+-1/sqrt(fan_in))).
    Linear weights are stored pre-transposed [in, out] and in bf16 (bandwidth);
    biases and BN params stay fp32."""
    ks = jax.random.split(key, 6)
    params = []
    dims = [(D0, D1, ks[0], ks[1]), (D1, D2, ks[2], ks[3]), (D2, D3, ks[4], ks[5])]
    for d_in, d_out, kw, kb in dims:
        gamma = jnp.ones((1, d_in), jnp.float32)
        beta = jnp.zeros((1, d_in), jnp.float32)
        bound = 1.0 / jnp.sqrt(d_in)
        w = jax.random.uniform(kw, (d_in, d_out), jnp.float32, -bound, bound)
        b = jax.random.uniform(kb, (1, d_out), jnp.float32, -bound, bound)
        params += [gamma, beta, w.astype(jnp.bfloat16), b]
    return params


def reference_forward(x, params):
    """Pure-JAX reference: training-mode BN in fp32; dots use the same bf16
    operands / fp32 accumulation as the kernel (mixed-precision reference)."""
    g1, be1, w1, b1, g2, be2, w2, b2, g3, be3, w3, b3 = params

    def bn(h, g, bta):
        mu = jnp.mean(h, axis=0, keepdims=True)
        var = jnp.mean(jnp.square(h - mu), axis=0, keepdims=True)
        return (h - mu) / jnp.sqrt(var + EPS) * g + bta

    def dot(a, w):
        return jnp.dot(a.astype(jnp.bfloat16), w,
                       preferred_element_type=jnp.float32)

    h = jnp.maximum(dot(bn(x, g1, be1), w1) + b1, 0.0)
    h = jnp.maximum(dot(bn(h, g2, be2), w2) + b2, 0.0)
    logits = dot(bn(h, g3, be3), w3) + b3
    return jax.nn.log_softmax(logits, axis=-1)


if __name__ == "__main__":
    key = jax.random.PRNGKey(0)
    kx, kp = jax.random.split(key)
    x = jax.random.normal(kx, (B, D0), jnp.float32)
    params = init_params(kp)

    out = net_forward(x, params)
    out = jax.block_until_ready(out)

    ref = reference_forward(x, params)
    assert out.shape == (B, D3), out.shape
    assert jnp.allclose(out, ref, atol=1e-2, rtol=1e-2), (out, ref)

    print("KERNEL_OK")
</pallas_src>

<mosaic_0001>
module attributes {stable_mosaic.version = 11 : i64} {
  func.func @fc1_kernel(%arg0: i32, %arg1: i32, %arg2: memref<8x512xf32, #tpu.memory_space<vmem>>, %arg3: memref<1x512xf32, #tpu.memory_space<vmem>>, %arg4: memref<1x512xf32, #tpu.memory_space<vmem>>, %arg5: memref<512x128xbf16, #tpu.memory_space<vmem>>, %arg6: memref<1x128xf32, #tpu.memory_space<vmem>>, %arg7: memref<8x128xf32, #tpu.memory_space<vmem>>) attributes {dimension_semantics = [#tpu.dimension_semantics<parallel>, #tpu.dimension_semantics<arbitrary>], iteration_bounds = array<i64: 2, 2>, scalar_prefetch = 0 : i64, scratch_operands = 0 : i64, tpu.core_type = #tpu.core_type<tc>, window_params = [{transform_indices = @transform_0, window_bounds = array<i64: 8, 512>}, {transform_indices = @transform_1, window_bounds = array<i64: 1, 512>}, {transform_indices = @transform_2, window_bounds = array<i64: 1, 512>}, {transform_indices = @transform_3, window_bounds = array<i64: 512, 128>}, {transform_indices = @transform_4, window_bounds = array<i64: 1, 128>}, {transform_indices = @transform_5, window_bounds = array<i64: 8, 128>}]} {
    %c0_i32 = arith.constant 0 : i32
    %0 = arith.cmpi eq, %arg1, %c0_i32 : i32
    %1 = arith.extui %0 : i1 to i32
    %c0_i32_0 = arith.constant 0 : i32
    %2 = arith.cmpi ne, %1, %c0_i32_0 : i32
    scf.if %2 {
      %cst_19 = arith.constant 0.000000e+00 : f32
      %38 = vector.broadcast %cst_19 : f32 to vector<8x128xf32>
      %c0_20 = arith.constant 0 : index
      %c0_21 = arith.constant 0 : index
      %39 = vector.load %arg7[%c0_20, %c0_21] : memref<8x128xf32, #tpu.memory_space<vmem>>, vector<8x128xf32>
      tpu.vector_store %arg7[%c0_20, %c0_21], %38 {strides = array<i32>} : memref<8x128xf32, #tpu.memory_space<vmem>>, vector<8x128xf32>,
    } else {
    }
    %c0 = arith.constant 0 : index
    %c0_1 = arith.constant 0 : index
    %3 = vector.load %arg2[%c0, %c0_1] : memref<8x512xf32, #tpu.memory_space<vmem>>, vector<8x512xf32>
    %cst = arith.constant dense<0.000000e+00> : vector<512xf32>
    %4 = vector.multi_reduction <add>, %3, %cst [0] : vector<8x512xf32> to vector<512xf32>
    %5 = vector.shape_cast %4 : vector<512xf32> to vector<1x512xf32>
    %cst_2 = arith.constant 8.000000e+00 : f32
    %6 = vector.broadcast %cst_2 : f32 to vector<1x512xf32>
    %7 = arith.divf %5, %6 : vector<1x512xf32>
    %8 = arith.mulf %3, %3 : vector<8x512xf32>
    %cst_3 = arith.constant dense<0.000000e+00> : vector<512xf32>
    %9 = vector.multi_reduction <add>, %8, %cst_3 [0] : vector<8x512xf32> to vector<512xf32>
    %10 = vector.shape_cast %9 : vector<512xf32> to vector<1x512xf32>
    %cst_4 = arith.constant 8.000000e+00 : f32
    %11 = vector.broadcast %cst_4 : f32 to vector<1x512xf32>
    %12 = arith.divf %10, %11 : vector<1x512xf32>
    %13 = arith.mulf %7, %7 : vector<1x512xf32>
    %14 = arith.subf %12, %13 : vector<1x512xf32>
    %cst_5 = arith.constant 0.000000e+00 : f32
    %15 = vector.broadcast %cst_5 : f32 to vector<1x512xf32>
    %16 = arith.maximumf %14, %15 : vector<1x512xf32>
    %c0_6 = arith.constant 0 : index
    %c0_7 = arith.constant 0 : index
    %17 = vector.load %arg3[%c0_6, %c0_7] : memref<1x512xf32, #tpu.memory_space<vmem>>, vector<1x512xf32>
    %cst_8 = arith.constant 9.99999974E-6 : f32
    %18 = vector.broadcast %cst_8 : f32 to vector<1x512xf32>
    %19 = arith.addf %16, %18 : vector<1x512xf32>
    %20 = math.rsqrt %19 : vector<1x512xf32>
    %21 = arith.mulf %17, %20 : vector<1x512xf32>
    %c0_9 = arith.constant 0 : index
    %c0_10 = arith.constant 0 : index
    %22 = vector.load %arg4[%c0_9, %c0_10] : memref<1x512xf32, #tpu.memory_space<vmem>>, vector<1x512xf32>
    %23 = arith.mulf %7, %21 : vector<1x512xf32>
    %24 = arith.subf %22, %23 : vector<1x512xf32>
    %25 = vector.broadcast %21 : vector<1x512xf32> to vector<8x512xf32>
    %26 = arith.mulf %3, %25 : vector<8x512xf32>
    %27 = vector.broadcast %24 : vector<1x512xf32> to vector<8x512xf32>
    %28 = arith.addf %26, %27 : vector<8x512xf32>
    %c0_11 = arith.constant 0 : index
    %c0_12 = arith.constant 0 : index
    %29 = vector.load %arg7[%c0_11, %c0_12] : memref<8x128xf32, #tpu.memory_space<vmem>>, vector<8x128xf32>
    %30 = arith.truncf %28 : vector<8x512xf32> to vector<8x512xbf16>
    %c0_13 = arith.constant 0 : index
    %c0_14 = arith.constant 0 : index
    %31 = vector.load %arg5[%c0_13, %c0_14] : memref<512x128xbf16, #tpu.memory_space<vmem>>, vector<512x128xbf16>
    %cst_15 = arith.constant dense<0.000000e+00> : vector<8x128xf32>
    %32 = tpu.matmul %30, %31, %cst_15 {dimension_numbers = #tpu.dot_dimension_numbers<[1], [0], [0], [1], [0, 0, 1, 1], [], []>} : vector<8x512xbf16>, vector<512x128xbf16>, vector<8x128xf32> -> vector<8x128xf32>
    %33 = arith.addf %29, %32 : vector<8x128xf32>
    %c0_16 = arith.constant 0 : index
    %c0_17 = arith.constant 0 : index
    %34 = vector.load %arg7[%c0_16, %c0_17] : memref<8x128xf32, #tpu.memory_space<vmem>>, vector<8x128xf32>
    tpu.vector_store %arg7[%c0_16, %c0_17], %33 {strides = array<i32>} : memref<8x128xf32, #tpu.memory_space<vmem>>, vector<8x128xf32>,
    %c1_i32 = arith.constant 1 : i32
    %35 = arith.cmpi eq, %arg1, %c1_i32 : i32
    %36 = arith.extui %35 : i1 to i32
    %c0_i32_18 = arith.constant 0 : i32
    %37 = arith.cmpi ne, %36, %c0_i32_18 : i32
    scf.if %37 {
      %c0_19 = arith.constant 0 : index
      %c0_20 = arith.constant 0 : index
      %38 = vector.load %arg7[%c0_19, %c0_20] : memref<8x128xf32, #tpu.memory_space<vmem>>, vector<8x128xf32>
      %c0_21 = arith.constant 0 : index
      %c0_22 = arith.constant 0 : index
      %39 = vector.load %arg6[%c0_21, %c0_22] : memref<1x128xf32, #tpu.memory_space<vmem>>, vector<1x128xf32>
      %40 = vector.broadcast %39 : vector<1x128xf32> to vector<8x128xf32>
      %41 = arith.addf %38, %40 : vector<8x128xf32>
      %cst_23 = arith.constant 0.000000e+00 : f32
      %42 = vector.broadcast %cst_23 : f32 to vector<8x128xf32>
      %43 = arith.maximumf %41, %42 : vector<8x128xf32>
      %c0_24 = arith.constant 0 : index
      %c0_25 = arith.constant 0 : index
      %44 = vector.load %arg7[%c0_24, %c0_25] : memref<8x128xf32, #tpu.memory_space<vmem>>, vector<8x128xf32>
      tpu.vector_store %arg7[%c0_24, %c0_25], %43 {strides = array<i32>} : memref<8x128xf32, #tpu.memory_space<vmem>>, vector<8x128xf32>,
    } else {
    }
    return
  }
  func.func @transform_0(%arg0: i32, %arg1: i32) -> (i32, i32) {
    %c0_i32 = arith.constant 0 : i32
    %c0_i32_0 = arith.constant 0 : i32
    return %c0_i32, %arg1 : i32, i32
  }
  func.func @transform_1(%arg0: i32, %arg1: i32) -> (i32, i32) {
    %c0_i32 = arith.constant 0 : i32
    %c0_i32_0 = arith.constant 0 : i32
    return %c0_i32, %arg1 : i32, i32
  }
  func.func @transform_2(%arg0: i32, %arg1: i32) -> (i32, i32) {
    %c0_i32 = arith.constant 0 : i32
    %c0_i32_0 = arith.constant 0 : i32
    return %c0_i32, %arg1 : i32, i32
  }
  func.func @transform_3(%arg0: i32, %arg1: i32) -> (i32, i32) {
    %c0_i32 = arith.constant 0 : i32
    return %arg1, %arg0 : i32, i32
  }
  func.func @transform_4(%arg0: i32, %arg1: i32) -> (i32, i32) {
    %c0_i32 = arith.constant 0 : i32
    %c0_i32_0 = arith.constant 0 : i32
    return %c0_i32, %arg0 : i32, i32
  }
  func.func @transform_5(%arg0: i32, %arg1: i32) -> (i32, i32) {
    %c0_i32 = arith.constant 0 : i32
    %c0_i32_0 = arith.constant 0 : i32
    return %c0_i32, %arg0 : i32, i32
  }
}

</mosaic_0001>

<bundles_post_ra>
// kernel: tpu_custom_call.1
= control target key start
LH: loop header
LB: loop body
LE: loop exit
PB: predicated region body
PF: predicated region fallthrough
CT: control target
= control target key end

     0   :  { %s2146_s0 = inlined_call_operand.hbm [shape: f32[8,1024], index: 0, kind: input, shape index: {}]   ;;  %s2147_s1 = inlined_call_operand.hbm [shape: f32[1,1024], index: 1, kind: input, shape index: {}]   ;;  %s2148_s2 = inlined_call_operand.hbm [shape: f32[1,1024], index: 2, kind: input, shape index: {}]   ;;  %s2149_s3 = inlined_call_operand.hbm [shape: bf16[1024,256], index: 3, kind: input, shape index: {}]   ;;  %s2150_s4 = inlined_call_operand.vmem [shape: f32[1,256], index: 4, kind: input, shape index: {}]   ;;  %s2151_s5 = inlined_call_operand.hbm [shape: f32[8,256], index: 5, kind: output, shape index: {}]  }
   0x1   :  { %2172 = sst [smem:[#allocation28_spill]] %s2147_s1 }
   0x2   :  { %2173 = sst [smem:[#allocation29_spill]] %s2148_s2 }
   0x3   :  { %2174 = sst [smem:[#allocation30_spill]] %s2150_s4 }
   0x4   :  { %2175 = sst [smem:[#allocation31_spill]] %s2151_s5 }
   0x5   :  { %10 = vsyncpa [#allocation3], 0 }
   0x6   :  { %12 = vsyncpa [#allocation3 + $0x1], 0 }
   0x7   :  { %13 = vsyncpa [#allocation6], 0 }
   0x8   :  { %15 = vsyncpa [#allocation6 + $0x1], 0 }
   0x9   :  { %16 = vsyncpa [#allocation9], 0 }
   0xa   :  { %18 = vsyncpa [#allocation9 + $0x1], 0 }
   0xb   :  { %19 = vsyncpa [#allocation4], 0 }
   0xc   :  { %21 = vsyncpa [#allocation4 + $0x1], 0  ;;  %s1727_s18 = smov 0   ;;  %s1729_s19 = smov 0  }
   0xd   :  { %s1731_s20 = smov 0   ;;  %s1733_s21 = smov 0  }
   0xe   :  { %s1735_s22 = smov 0   ;;  %s1737_s23 = smov 0  }
   0xf   :  { %s1739_s24 = smov 0   ;;  %s1741_s25 = smov 0  }
  0x10   :  { %s1743_s26 = smov 0   ;;  %s1745_s27 = smov 0  }
  0x11   :  { %s1747_s28 = smov 0   ;;  %s1749_s29 = smov 0  }
  0x12   :  { %s1751_s30 = smov 0   ;;  %s1753_s6 = smov 0  }
  0x13 LB: > { %2176 = sst [smem:[#allocation15_spill]] %s1633_s18  ;;  %s1796_s7 = sadd.s32 4294967295, %s1685_s6   ;;  %s1685_s6 = sphi %s1753_s6, %s27_s6   ;;  %s1681_s30 = sphi %s1751_s30, %s2239_s30   ;;  %s1677_s29 = sphi %s1749_s29, %s2238_s29   ;;  %s1673_s28 = sphi %s1747_s28, %s2237_s28   ;;  %s1669_s27 = sphi %s1745_s27, %s2236_s27   ;;  %s1665_s26 = sphi %s1743_s26, %s2235_s26   ;;  %s1661_s25 = sphi %s1741_s25, %s2234_s25   ;;  %s1657_s24 = sphi %s1739_s24, %s2233_s24   ;;  %s1653_s23 = sphi %s1737_s23, %s2232_s23   ;;  %s1649_s22 = sphi %s1735_s22, %s2231_s22   ;;  %s1645_s21 = sphi %s1733_s21, %s2225_s21   ;;  %s1641_s20 = sphi %s1731_s20, %s2230_s20   ;;  %s1637_s19 = sphi %s1729_s19, %s2229_s19   ;;  %s1633_s18 = sphi %s1727_s18, %s2224_s18  }
  0x14   : > { %2177 = sst [smem:[#allocation16_spill]] %s1637_s19  ;;  %s1126_s8 = sadd.s32 4294967294, %s1685_s6  }
  0x15   : > { %2178 = sst [smem:[#allocation17_spill]] %s1649_s22  ;;  %s36_s9 = sadd.s32 1, %s1677_s29 }
  0x16   : > { %2179 = sst [smem:[#allocation18_spill]] %s1665_s26  ;;  %s46_s10 = sadd.s32 1, %s1665_s26 }
  0x17   : > { %2180 = sst [smem:[#allocation19_spill]] %s1669_s27  ;;  %p1801_p0 = scmp.ge.s32.totalorder %s36_s9, 2 }
  0x18   : > { %2181 = sst [smem:[#allocation20_spill]] %s1673_s28  ;;  %p53_p1 = scmp.ne.s32.totalorder %s1665_s26, %s1661_s25 }
  0x19   : > { %2182 = sst [smem:[#allocation21_spill]] %s1685_s6  ;;  %p54_p2 = scmp.eq.s32.totalorder %s1685_s6, 0 }
  0x1a   : > { %2183 = sst [smem:[#allocation22_spill]] %s1796_s7  ;;  %p59_p3 = scmp.ne.s32.totalorder %s1661_s25, %s1657_s24 }
  0x1b   : > { %s2184_s11 = scalar_select %p1801_p0, 1, 0 }
  0x1c   : > { %s2241_s9 = smov (%p1801_p0, %s36_s9), 0  ;;  %p1813_p4 = por %p54_p2, %p53_p1 }
  0x1d   : > { %2185 = sst [smem:[#allocation23_spill]] %s2241_s9  ;;  %p60_p5 = scmp.eq.s32.totalorder %s1796_s7, 0 }
  0x1e   : > { %s1820_s13 = ssub.s32 %s1677_s29, %s2241_s9  ;;  %p133_p8 = scmp.ne.s32.totalorder %s1653_s23, %s1649_s22 }
  0x1f   : > { %p44_p6 = scmp.eq.s32.totalorder %s1820_s13, 0  ;;  %p1824_p7 = por %p60_p5, %p59_p3 }
  0x20   : > { %p139_p9 = scmp.ne.s32.totalorder %s1649_s22, %s1645_s21  ;;  %p1835_p10 = por %p133_p8, %p54_p2 }
  0x21   : > { %s2187_s15 = scalar_select %p1824_p7, 1, 0 }
  0x22   : > { %s1833_s16 = scalar_select %p44_p6, %s1665_s26, %s46_s10  }
  0x23   : > { %p1839_p11 = por %p139_p9, %p60_p5  ;;  %p188_p12 = scmp.ne.s32.totalorder %s1641_s20, %s1637_s19 }
  0x24   : > { %2188 = sst [smem:[#allocation24_spill]] %s1833_s16  ;;  %p189_p13 = scmp.eq.s32.totalorder %s1796_s7, 3 }
  0x25   : > { %s2190_s24 = scalar_select %p1839_p11, 1, 0 }
  0x26   : > { %p194_p1 = scmp.ne.s32.totalorder %s1637_s19, %s1633_s18  ;;  %p195_p3 = scmp.eq.s32.totalorder %s1126_s8, 3 }
  0x27   : > { %2191 = sst [smem:[#allocation25_spill]] %s2190_s24  ;;  %p1848_p0 = por %p189_p13, %p188_p12 }
  0x28   : > { %p1852_p7 = por %p195_p3, %p194_p1  ;;  %p1262_p2 = scmp.lt.s32.totalorder %s1685_s6, 4 }
  0x29   : > { %s2192_s14 = scalar_select %p1848_p0, 1, 0 }
  0x2a   : > { %s2194_s21 = scalar_select %p1852_p7, 1, 0 }
  0x2b   : > { %2193 = sst [smem:[#allocation26_spill]] %s2192_s14  ;;  %s1858_s10 = sand.u32 1, %s1665_s26  }
  0x2c   : > { %2195 = sst [smem:[#allocation27_spill]] %s2194_s21  ;;  %s234_s9 = sand.u32 1, %s1685_s6  }
  0x2d   : > { %p1865_p5 = pnand %p1262_p2, %p1813_p4  ;;  %s1132_s8 = sshll.u32 %s1858_s10, 2 }
  0x2e   : > { %s1188_s18 = sshll.u32 %s1677_s29, 6  ;;  %s2197_s1 = sld [smem:[#allocation28_spill]] }
  0x2f   : > { %s238_s26 = scalar_lea.vmem [#allocation5], %s1132_s8  ;;  %s1876_s4 = scalar_lea.sflag [#allocation6], %s234_s9 }
  0x30   : > { %s246_s27 = sshll.u32 %s238_s26, 4  ;;  %p1423_p6 = pneg %p1865_p5  ;;  %s247_s27 = int_to_ptr.vmem [resolvable:$true] %s246_s27 }
  0x31   : > { %s1434_s12 = scalar_lea.vmem %s247_s27, 64  ;;  %s1687_s28 = smov [#allocation5]  }
  0x32   : > { %p1435_p4 = scmp.ne.s32.totalorder %s247_s27, %s1434_s12  ;;  %s1439_s19 = sshll.u32 %s1687_s28, 4  ;;  %s1440_s19 = int_to_ptr.vmem [resolvable:$false] %s1439_s19 }
  0x33   : > { %s1441_s24 = scalar_lea.vmem %s1440_s19, 128  ;;  %p1442_p12 = scmp.lt.s32.totalorder %s247_s27, %s1440_s19 }
  0x34   : > { %s244_s21 = scalar_lea.hbm %s2197_s1, %s1188_s18  ;;  %p1437_p8 = pnand %p1435_p4, %p1423_p6 }
  0x35   : > { %p1443_p13 = scmp.lt.s32.totalorder %s1441_s24, %s1434_s12 }
  0x36   : > { %p1438_p9 = pneg %p1437_p8 }
  0x37   : > { %p1444_p1 = por %p1443_p13, %p1442_p12 }
  0x39   : > { %p1445_p3 = pnand %p1444_p1, %p1438_p9 }
  0x3b   : > { %1448 = shalt.err (!%p1445_p3)
}
  0x3c   : > { %1251 = dma.hbm_to_vmem [thread:$0]  (!%p1865_p5), %s244_s21, 64, %s247_s27, %s1876_s4  }
  0x3d   : > { %s2198_s2 = sld [smem:[#allocation29_spill]]  ;;  %p1895_p4 = pnand %p1262_p2, %p1835_p10 }
  0x3e   : > { %p1142_p8 = scmp.ge.s32.totalorder %s1685_s6, 1  ;;  %p299_p9 = scmp.lt.s32.totalorder %s1685_s6, 5 }
  0x3f   : > { %s1129_s14 = sshll.u32 %s1858_s10, 5  ;;  %s1187_s27 = sshll.u32 %s1677_s29, 9 }
  0x40   : > { %p1901_p12 = pnand %p1142_p8, %p299_p9  ;;  %s219_s12 = scalar_lea.vmem [#allocation2], %s1129_s14 }
  0x41   : > { %s227_s17 = sshll.u32 %s219_s12, 4  ;;  %s257_s5 = scalar_lea.vmem [#allocation7], %s1132_s8  ;;  %s228_s17 = int_to_ptr.vmem [resolvable:$true] %s227_s17 }
  0x42   : > { %s265_s26 = sshll.u32 %s257_s5, 4  ;;  %s216_s1 = scalar_lea.sflag [#allocation3], %s1858_s10  ;;  %s266_s26 = int_to_ptr.vmem [resolvable:$true] %s265_s26 }
  0x43   : > { %s1889_s19 = scalar_lea.hbm %s2198_s2, %s1188_s18  ;;  %s225_s18 = scalar_lea.hbm %s2146_s0, %s1187_s27 }
  0x44   : > { %s1462_s2 = scalar_lea.vmem %s228_s17, 512  ;;  %s1688_s6 = smov [#allocation2]  }
  0x45   : > { %p1463_p10 = scmp.ne.s32.totalorder %s228_s17, %s1462_s2  ;;  %s1467_s22 = sshll.u32 %s1688_s6, 4  ;;  %s1468_s22 = int_to_ptr.vmem [resolvable:$false] %s1467_s22 }
  0x46   : > { %s1469_s7 = scalar_lea.vmem %s1468_s22, 1024  ;;  %p1470_p1 = scmp.lt.s32.totalorder %s228_s17, %s1468_s22 }
  0x47   : > { %p1465_p2 = pnand %p1463_p10, %p1423_p6  ;;  %p1471_p3 = scmp.lt.s32.totalorder %s1469_s7, %s1462_s2 }
  0x49   : > { %p1466_p13 = pneg %p1465_p2  ;;  %p1472_p8 = por %p1471_p3, %p1470_p1 }
  0x4b   : > { %p1473_p9 = pnand %p1472_p8, %p1466_p13 }
  0x4d   : > { %1476 = shalt.err (!%p1473_p9)
}
  0x4e   : > { %1248 = dma.hbm_to_vmem [thread:$0]  (!%p1865_p5), %s225_s18, 512, %s228_s17, %s216_s1  }
  0x4f   : > { %s1490_s10 = scalar_lea.vmem %s266_s26, 64  ;;  %s1689_s8 = smov [#allocation7]  }
  0x50   : > { %p1491_p7 = scmp.ne.s32.totalorder %s266_s26, %s1490_s10  ;;  %s1495_s6 = sshll.u32 %s1689_s8, 4  ;;  %s1496_s6 = int_to_ptr.vmem [resolvable:$false] %s1495_s6 }
  0x51   : > { %s1497_s14 = scalar_lea.vmem %s1496_s6, 128  ;;  %p1498_p0 = scmp.lt.s32.totalorder %s266_s26, %s1496_s6 }
  0x52   : > { %p1493_p10 = pnand %p1491_p7, %p1423_p6  ;;  %p1499_p11 = scmp.lt.s32.totalorder %s1497_s14, %s1490_s10 }
  0x54   : > { %p1494_p2 = pneg %p1493_p10  ;;  %p1500_p1 = por %p1499_p11, %p1498_p0 }
  0x56   : > { %p1501_p13 = pnand %p1500_p1, %p1494_p2 }
  0x58   : > { %1504 = shalt.err (!%p1501_p13)
}
  0x59   : > { %1254 = dma.hbm_to_vmem [thread:$0]  (!%p1865_p5), %s1889_s19, 64, %s266_s26, %s1876_s4  }
  0x5a   : > { %s178_s1 = sadd.s32 1, %s1641_s20  ;;  %s39_s2 = sadd.s32 1, %s1681_s30 }
  0x5b   : > { %s272_s22 = sand.u32 1, %s1653_s23   ;;  %p2201_p0 = scmp.ne.s32.totalorder %s2184_s11, 0 }
  0x5c   : > { %s1138_s7 = sshll.u32 %s272_s22, 8  ;;  %s1190_s16 = sshll.u32 %s1677_s29, 7 }
  0x5d   : > { %s2243_s2 = smov (!%p2201_p0, %s39_s2), %s1681_s30  ;;  %s276_s27 = scalar_lea.vmem [#allocation8], %s1138_s7 }
  0x5e   : > { %p41_p7 = scmp.ge.s32.totalorder %s2243_s2, 2  ;;  %s285_s24 = sshll.u32 %s276_s27, 4  ;;  %s1935_s24 = int_to_ptr.vmem [resolvable:$true] %s285_s24 }
  0x5f   : > { %s282_s21 = sadd.s32 %s1681_s30, %s1190_s16  ;;  %s2202_s26 = sadd.s32 1, %s1653_s23 }
  0x60   : > { %s2245_s2 = smov (%p41_p7, %s2243_s2), 0  ;;  %s1141_s11 = sshll.u32 %s282_s21, 6 }
  0x61   : > { %s122_s4 = ssub.s32 %s1681_s30, %s2245_s2  ;;  %s284_s17 = scalar_lea.hbm %s2149_s3, %s1141_s11 }
  0x62   : > { %s123_s19 = sor.u32 %s122_s4, %s1820_s13  ;;  %p176_p11 = scmp.eq.s32.totalorder %s122_s4, 0 }
  0x63   : > { %p124_p5 = scmp.eq.s32.totalorder %s123_s19, 0  ;;  %s273_s8 = scalar_lea.sflag [#allocation9], %s272_s22 }
  0x64   : > { %s1944_s5 = scalar_select %p176_p11, %s1641_s20, %s178_s1  }
  0x65   : > { %s1949_s10 = scalar_select %p124_p5, %s1653_s23, %s2202_s26  }
  0x66   : > { %p1507_p6 = pneg %p1895_p4  ;;  %s1518_s6 = scalar_lea.vmem %s1935_s24, 4096 }
  0x67   : > { %p1519_p3 = scmp.ne.s32.totalorder %s1935_s24, %s1518_s6  ;;  %s1690_s13 = smov [#allocation8]  }
  0x68   : > { %s1523_s14 = sshll.u32 %s1690_s13, 4  ;;  %s1524_s14 = int_to_ptr.vmem [resolvable:$false] %s1523_s14 }
  0x69   : > { %p1521_p8 = pnand %p1519_p3, %p1507_p6  ;;  %s1525_s7 = scalar_lea.vmem %s1524_s14, 8192 }
  0x6a   : > { %p1526_p10 = scmp.lt.s32.totalorder %s1935_s24, %s1524_s14  ;;  %p1527_p2 = scmp.lt.s32.totalorder %s1525_s7, %s1518_s6 }
  0x6b   : > { %p1522_p9 = pneg %p1521_p8 }
  0x6c   : > { %p1528_p1 = por %p1527_p2, %p1526_p10 }
  0x6e   : > { %p1529_p13 = pnand %p1528_p1, %p1522_p9 }
  0x70   : > { %1532 = shalt.err (!%p1529_p13)
}
  0x71   : > { %s1691_s1 = smov 128   ;;  %s1692_s16 = smov 64  }
  0x72   : > { %s1693_s22 = smov 4   ;;  %303 = sbr.rel (%p1901_p12) target bundleno = 485 (0x1e5), region = 40 }
  0x73   : > { %1257 = dma.hbm_to_vmem [thread:$0]  (!%p1895_p4), %s284_s17, 4096, %s1935_s24, %s273_s8, %s1691_s1, %s1692_s16, %s1693_s22  }
  0x74   : > { %s305_s27 = sand.u32 (!%p1901_p12), 1, %s1661_s25   ;;  %p2203_p0 = scmp.ne.s32.totalorder (!%p1901_p12), %s2187_s15, 0 }
  0x75   : > { %s1143_s21 = sshll.u32 (!%p1901_p12), %s305_s27, 5  ;;  %s306_s4 = scalar_lea.sflag (!%p1901_p12), [#allocation3], %s305_s27 }
  0x76   : > { %s1962_s11 = scalar_lea.vmem (!%p1901_p12), [#allocation2], %s1143_s21 }
  0x77   : > { %1616 = dma.done.wait (%p2203_p0), %s306_s4, 512  }
  0x78   : > { %1618 = vsyncadd (%p2203_p0), %s306_s4, 4294966784  ;;  %s2204_s19 = sld [smem:[#allocation22_spill]]  ;;  %s1144_s28 = sshll.u32 %s305_s27, 2 }
  0x79   : > { %s1969_s12 = scalar_lea.vmem [#allocation5], %s1144_s28 }
  0x7e   : > { %s314_s18 = sand.u32 1, %s2204_s19  }
  0x7f   : > { %s315_s24 = scalar_lea.sflag [#allocation6], %s314_s18 }
  0x80   : > { %1620 = dma.done.wait (%p2203_p0), %s315_s24, 128  }
  0x81   : > { %1622 = vsyncadd (%p2203_p0), %s315_s24, 4294967168  ;;  %s2205_s9 = sld [smem:[#allocation17_spill]]  ;;  %s1976_s6 = scalar_lea.vmem [#allocation7], %s1144_s28 }
  0x82   : > { %s2206_s17 = sld [smem:[#allocation25_spill]] }
  0x87   : > { %s332_s26 = sand.u32 1, %s2205_s9  }
  0x88   : > { %s1146_s8 = sshll.u32 %s332_s26, 8  ;;  %s333_s13 = scalar_lea.sflag [#allocation9], %s332_s26 }
  0x89   : > { %s1978_s14 = scalar_lea.vmem [#allocation8], %s1146_s8  ;;  %p2207_p4 = scmp.ne.s32.totalorder %s2206_s17, 0 }
  0x8b   : > { %1624 = dma.done.wait (%p2207_p4), %s333_s13, 4096  }
  0x8c   : > { %1626 = vsyncadd (%p2207_p4), %s333_s13, 4294963200  ;;  %s2208_s7 = sld [smem:[#allocation16_spill]] }
  0x8d   : > { %s2209_s1 = sld [smem:[#allocation20_spill]] }
  0x8e   : > { %s2210_s21 = sld [smem:[#allocation30_spill]] }
  0x8f   : > { %s2211_s18 = sld [smem:[#allocation19_spill]] }
  0x92   : > { %s378_s15 = sand.u32 1, %s2208_s7  }
  0x93   : > { %p385_p12 = scmp.lt.s32.totalorder %s2209_s1, 1  ;;  %s1147_s16 = sshll.u32 %s378_s15, 3 }
  0x94   : > { %s1995_s19 = scalar_lea.vmem [#allocation10], %s1147_s16 }
  0x95   : > { %s2247_s1 = smov (!%p385_p12, %s2209_s1), 1  ;;  %p1148_p7 = scmp.ne.s32.totalorder %s2211_s18, 0 }
  0x96   : > { %s387_s4 = scalar_lea.vmem %s2210_s21, %s2247_s1 }
  0x97   : > { %392 = sbr.rel (%p1148_p7) target bundleno = 158 (0x9e), region = 60 }
  0x9c   : > { %v1694_v0 = vmov 0.0  }
  0x9d   : > { %393 = vst [vmem:[%s1995_s19] sm:$0xff] %v1694_v0 }
  0x9e PF: > { %v1381_v1 = vld [vmem:[%s1978_s14 + $0x78] sm:$0xff]   ;;  %v1385_v5 = vld [vmem:[%s1978_s14 + $0x70] sm:$0xff]   ;;  %v1389_v9 = vld [vmem:[%s1978_s14 + $0x68] sm:$0xff]  }
  0x9f   : > { %v1382_v2 = vld [vmem:[%s1978_s14 + $0xf8] sm:$0xff]   ;;  %1191 = vmatprep.subr.bf16.mxu0 %v1381_v1  ;;  %v1386_v6 = vld [vmem:[%s1978_s14 + $0xf0] sm:$0xff]   ;;  %v1390_v10 = vld [vmem:[%s1978_s14 + $0xe8] sm:$0xff]  }
  0xa0   : > { %v1383_v3 = vld [vmem:[%s1978_s14 + $0x38] sm:$0xff]   ;;  %1213 = vmatprep.subr.bf16.mxu1 %v1382_v2  ;;  %v1387_v7 = vld [vmem:[%s1978_s14 + $0x30] sm:$0xff]   ;;  %v1391_v11 = vld [vmem:[%s1978_s14 + $0x28] sm:$0xff]  }
  0xa1   : > { %v1384_v4 = vld [vmem:[%s1978_s14 + $0xb8] sm:$0xff]   ;;  %1192 = vmatpush3.bf16.msra.mxu0 %v1383_v3  ;;  %v1388_v8 = vld [vmem:[%s1978_s14 + $0xb0] sm:$0xff]   ;;  %v1392_v12 = vld [vmem:[%s1978_s14 + $0xa8] sm:$0xff]  }
  0xa2   : > { %1214 = vmatpush3.bf16.msra.mxu1 %v1384_v4  ;;  %1193 = vmatprep.subr.bf16.mxu0 %v1385_v5  ;;  %v1393_v13 = vld [vmem:[%s1978_s14 + $0x60] sm:$0xff]   ;;  %v1397_v17 = vld [vmem:[%s1978_s14 + $0x58] sm:$0xff]   ;;  %v1401_v21 = vld [vmem:[%s1978_s14 + $0x50] sm:$0xff]  }
  0xa3   : > { %1215 = vmatprep.subr.bf16.mxu1 %v1386_v6  ;;  %v1394_v14 = vld [vmem:[%s1978_s14 + $0xe0] sm:$0xff]   ;;  %v1398_v18 = vld [vmem:[%s1978_s14 + $0xd8] sm:$0xff]   ;;  %v1402_v22 = vld [vmem:[%s1978_s14 + $0xd0] sm:$0xff]  }
  0xa4   : > { %v1395_v15 = vld [vmem:[%s1978_s14 + $0x20] sm:$0xff]   ;;  %v1399_v19 = vld [vmem:[%s1978_s14 + $0x18] sm:$0xff]   ;;  %v1403_v23 = vld [vmem:[%s1978_s14 + $0x10] sm:$0xff]  }
  0xa5   : > { %1194 = vmatpush3.bf16.msra.mxu0 %v1387_v7  ;;  %v1396_v16 = vld [vmem:[%s1978_s14 + $0xa0] sm:$0xff]   ;;  %v1400_v20 = vld [vmem:[%s1978_s14 + $0x98] sm:$0xff]   ;;  %v1404_v24 = vld [vmem:[%s1978_s14 + $0x90] sm:$0xff]  }
  0xa6   : > { %1216 = vmatpush3.bf16.msra.mxu1 %v1388_v8  ;;  %1195 = vmatprep.subr.bf16.mxu0 %v1389_v9  ;;  %v1405_v25 = vld [vmem:[%s1978_s14 + $0x48] sm:$0xff]   ;;  %v1409_v29 = vld [vmem:[%s1978_s14 + $0x40] sm:$0xff]   ;;  %v2032_v33 = vld [vmem:[%s1962_s11] sm:$0xff] }
  0xa7   : > { %1217 = vmatprep.subr.bf16.mxu1 %v1390_v10  ;;  %v1406_v26 = vld [vmem:[%s1978_s14 + $0xc8] sm:$0xff]   ;;  %v1410_v30 = vld [vmem:[%s1978_s14 + $0xc0] sm:$0xff]   ;;  %v2035_v34 = vld [vmem:[%s1962_s11 + $0x8] sm:$0xff]  ;;  %v398_v37 = vrot.slane %v2032_v33, 4  ;;  %v427_v40 = vmul.f32 %v2032_v33, %v2032_v33 }
  0xa8   : > { %v1407_v27 = vld [vmem:[%s1978_s14 + $0x8] sm:$0xff]   ;;  %v1411_v31 = vld [vmem:[%s1978_s14] sm:$0xff]   ;;  %v404_v38 = vrot.slane %v2035_v34, 4  ;;  %v428_v42 = vmul.f32 %v2035_v34, %v2035_v34 }
  0xa9   : > { %1196 = vmatpush3.bf16.msra.mxu0 %v1391_v11  ;;  %v1408_v28 = vld [vmem:[%s1978_s14 + $0x88] sm:$0xff]   ;;  %v1412_v32 = vld [vmem:[%s1978_s14 + $0x80] sm:$0xff]   ;;  %v399_v45 = vadd.f32 %v398_v37, %v2032_v33  ;;  %v431_v48 = vrot.slane %v427_v40, 4 }
  0xaa   : > { %1218 = vmatpush3.bf16.msra.mxu1 %v1392_v12  ;;  %1197 = vmatprep.subr.bf16.mxu0 %v1393_v13  ;;  %v2038_v35 = vld [vmem:[%s1962_s11 + $0x10] sm:$0xff]  ;;  %v2041_v36 = vld [vmem:[%s1962_s11 + $0x18] sm:$0xff]  ;;  %v405_v46 = vadd.f32 %v404_v38, %v2035_v34  ;;  %v437_v50 = vrot.slane %v428_v42, 4  ;;  %s2212_s11 = sld [smem:[#allocation19_spill]] }
  0xab   : > { %1219 = vmatprep.subr.bf16.mxu1 %v1394_v14  ;;  %v410_v39 = vrot.slane %v2038_v35, 4  ;;  %v416_v41 = vrot.slane %v2041_v36, 4  ;;  %v429_v43 = vmul.f32 %v2038_v35, %v2038_v35  ;;  %v430_v44 = vmul.f32 %v2041_v36, %v2041_v36 }
  0xac   : > { %v400_v53 = vrot.slane %v399_v45, 2  ;;  %v406_v54 = vrot.slane %v405_v46, 2  ;;  %v432_v56 = vadd.f32 %v431_v48, %v427_v40  ;;  %v438_v58 = vadd.f32 %v437_v50, %v428_v42 }
  0xad   : > { %1198 = vmatpush3.bf16.msra.mxu0 %v1395_v15  ;;  %v411_v47 = vadd.f32 %v410_v39, %v2038_v35  ;;  %v417_v49 = vadd.f32 %v416_v41, %v2041_v36  ;;  %v443_v51 = vrot.slane %v429_v43, 4  ;;  %v449_v52 = vrot.slane %v430_v44, 4 }
  0xae   : > { %1220 = vmatpush3.bf16.msra.mxu1 %v1396_v16  ;;  %1199 = vmatprep.subr.bf16.mxu0 %v1397_v17  ;;  %v401_v61 = vadd.f32 %v400_v53, %v399_v45  ;;  %v407_v62 = vadd.f32 %v406_v54, %v405_v46  ;;  %v433_v0 = vrot.slane %v432_v56, 2  ;;  %v439_v2 = vrot.slane %v438_v58, 2 }
  0xaf   : > { %1221 = vmatprep.subr.bf16.mxu1 %v1398_v18  ;;  %v412_v55 = vrot.slane %v411_v47, 2  ;;  %v418_v57 = vrot.slane %v417_v49, 2  ;;  %v444_v59 = vadd.f32 %v443_v51, %v429_v43  ;;  %v450_v60 = vadd.f32 %v449_v52, %v430_v44 }
  0xb0   : > { %v402_v5 = vrot.slane %v401_v61, 1  ;;  %v408_v6 = vrot.slane %v407_v62, 1  ;;  %v434_v8 = vadd.f32 %v433_v0, %v432_v56  ;;  %v440_v10 = vadd.f32 %v439_v2, %v438_v58  ;;  %p1181_p11 = scmp.ne.s32.totalorder %s2212_s11, 1 }
  0xb1   : > { %1200 = vmatpush3.bf16.msra.mxu0 %v1399_v19  ;;  %v413_v63 = vadd.f32 %v412_v55, %v411_v47  ;;  %v419_v1 = vadd.f32 %v418_v57, %v417_v49  ;;  %v445_v3 = vrot.slane %v444_v59, 2  ;;  %v451_v4 = vrot.slane %v450_v60, 2 }
  0xb2   : > { %1222 = vmatpush3.bf16.msra.mxu1 %v1400_v20  ;;  %1201 = vmatprep.subr.bf16.mxu0 %v1401_v21  ;;  %v403_v13 = vadd.f32 %v402_v5, %v401_v61  ;;  %v409_v14 = vadd.f32 %v408_v6, %v407_v62  ;;  %v435_v16 = vrot.slane %v434_v8, 1  ;;  %v441_v18 = vrot.slane %v440_v10, 1 }
  0xb3   : > { %1223 = vmatprep.subr.bf16.mxu1 %v1402_v22  ;;  %v414_v7 = vrot.slane %v413_v63, 1  ;;  %v420_v9 = vrot.slane %v419_v1, 1  ;;  %v446_v11 = vadd.f32 %v445_v3, %v444_v59  ;;  %v452_v12 = vadd.f32 %v451_v4, %v450_v60  ;;  %v471_v4 = vld [vmem:[%s1969_s12] sm:$0xf] }
  0xb4   : > { %v423_v21 = vmul.f32 0.125, %v403_v13  ;;  %v424_v22 = vmul.f32 0.125, %v409_v14  ;;  %v1695_v53 = vmov 1966171168   ;;  %v489_v55 = vlaneseq }
  0xb5   : > { %1202 = vmatpush3.bf16.msra.mxu0 %v1403_v23  ;;  %v415_v15 = vadd.f32 %v414_v7, %v413_v63  ;;  %v421_v17 = vadd.f32 %v420_v9, %v419_v1  ;;  %v447_v19 = vrot.slane %v446_v11, 1  ;;  %v453_v20 = vrot.slane %v452_v12, 1 }
  0xb6   : > { %1224 = vmatpush3.bf16.msra.mxu1 %v1404_v24  ;;  %1203 = vmatprep.subr.bf16.mxu0 %v1405_v25  ;;  %v436_v24 = vadd.f32 %v435_v16, %v434_v8  ;;  %v487_v54 = vunpack.c.l.s4 %v1695_v53  ;;  %v490_v57 = vshrl.u32 %v489_v55, 7 }
  0xb7   : > { %1225 = vmatprep.subr.bf16.mxu1 %v1406_v26  ;;  %v425_v23 = vmul.f32 0.125, %v415_v15  ;;  %v426_v25 = vmul.f32 0.125, %v421_v17  ;;  %v442_v26 = vadd.f32 %v441_v18, %v440_v10 }
  0xb8   : > { %v488_v56 = vunpack.c.0.s8 %v487_v54  ;;  %v514_v5 = vsub.s32 0, %v490_v57  ;;  %v518_v7 = vsub.s32 1, %v490_v57  ;;  %v522_v8 = vsub.s32 2, %v490_v57 }
  0xb9   : > { %1204 = vmatpush3.bf16.msra.mxu0 %v1407_v27  ;;  %v448_v27 = vadd.f32 %v447_v19, %v446_v11  ;;  %v456_v37 = vmul.f32 0.125, %v442_v26  ;;  %v462_v40 = vmul.f32 %v426_v25, %v426_v25  ;;  %v526_v9 = vsub.s32 3, %v490_v57 }
  0xba   : > { %1226 = vmatpush3.bf16.msra.mxu1 %v1408_v28  ;;  %1205 = vmatprep.subr.bf16.mxu0 %v1409_v29  ;;  %v454_v28 = vadd.f32 %v453_v20, %v452_v12  ;;  %v455_v29 = vmul.f32 0.125, %v436_v24  ;;  %v491_v59 = vsub.s32 %v488_v56, %v490_v57 }
  0xbb   : > { %1227 = vmatprep.subr.bf16.mxu1 %v1410_v30  ;;  %v459_v30 = vmul.f32 %v423_v21, %v423_v21  ;;  %v457_v38 = vmul.f32 0.125, %v448_v27 }
  0xbc   : > { %v458_v39 = vmul.f32 0.125, %v454_v28  ;;  %v510_v28 = vld [vmem:[%s1976_s6] sm:$0xf] }
  0xbd   : > { %1206 = vmatpush3.bf16.msra.mxu0 %v1411_v31  ;;  %v460_v31 = vmul.f32 %v424_v22, %v424_v22  ;;  %v463_v41 = vsub.f32 %v455_v29, %v459_v30 }
  0xbe   : > { %1228 = vmatpush3.bf16.msra.mxu1 %v1412_v32  ;;  %v461_v32 = vmul.f32 %v425_v23, %v425_v23  ;;  %v466_v44 = vsub.f32 %v458_v39, %v462_v40 }
  0xbf   : > { %v464_v42 = vsub.f32 %v456_v37, %v460_v31  ;;  %v467_v45 = vmax.f32 %v463_v41, 0.0 }
  0xc0   : > { %v465_v43 = vsub.f32 %v457_v38, %v461_v32  ;;  %v470_v48 = vmax.f32 %v466_v44, 0.0 }
  0xc1   : > { %v468_v46 = vmax.f32 %v464_v42, 0.0  ;;  %v472_v49 = vadd.f32 1e-05, %v467_v45 }
  0xc2   : > { %v469_v47 = vmax.f32 %v465_v43, 0.0  ;;  %v475_v52 = vadd.f32 1e-05, %v470_v48 }
  0xc3   : > { %v473_v50 = vadd.f32 1e-05, %v468_v46  ;;  %1413 = vrsqrt.f32 %v472_v49  ;;  %v595_v49 = vld [vmem:[%s1995_s19] sm:$0xff] }
  0xc4   : > { %v474_v51 = vadd.f32 1e-05, %v469_v47 }
  0xc5   : > { %1415 = vrsqrt.f32 %v473_v50 }
  0xc6   : > { %1417 = vrsqrt.f32 %v474_v51 }
  0xc7   : > { %1419 = vrsqrt.f32 %v475_v52 }
  0xd0   : > { %v1414_v58 = vpop.eup %1413 }
  0xd2   : > { %v1416_v60 = vpop.eup %1415 }
  0xd3   : > { %v1418_v61 = vpop.eup %1417  ;;  %v484_v62 = vcombine.low %v1414_v58, %v1416_v60 }
  0xd4   : > { %v1420_v63 = vpop.eup %1419 }
  0xd5   : > { %v485_v0 = vcombine.low %v1418_v61, %v1420_v63  ;;  %v492_v1 = vrot.slane %v484_v62, %v491_v59 }
  0xd7   : > { %v499_v2 = vrot.slane %v485_v0, %v491_v59 }
  0xd9   : > { %v500_v3 = vcombine.low %v492_v1, %v499_v2 }
  0xdb   : > { %v507_v6 = vrot.slane %v500_v3, %v491_v59 }
  0xdd   : > { %v509_v10 = vmul.f32 %v507_v6, %v471_v4 }
  0xdf   : > { %v515_v11 = vrot.slane %v509_v10, %v514_v5  ;;  %v519_v12 = vrot.slane %v509_v10, %v518_v7  ;;  %v523_v13 = vrot.slane %v509_v10, %v522_v8  ;;  %v527_v14 = vrot.slane %v509_v10, %v526_v9 }
  0xe1   : > { %v532_v15 = vmul.f32 %v515_v11, %v423_v21  ;;  %v533_v16 = vmul.f32 %v519_v12, %v424_v22  ;;  %v534_v17 = vmul.f32 %v523_v13, %v425_v23  ;;  %v535_v18 = vmul.f32 %v527_v14, %v426_v25 }
  0xe2   : > { %v567_v30 = vmul.f32 %v519_v12, %v2035_v34  ;;  %v569_v32 = vmul.f32 %v527_v14, %v2041_v36  ;;  %v566_v37 = vmul.f32 %v515_v11, %v2032_v33  ;;  %v568_v38 = vmul.f32 %v523_v13, %v2038_v35 }
  0xe3   : > { %v540_v19 = vcombine.low %v532_v15, %v533_v16  ;;  %v541_v20 = vcombine.low %v534_v17, %v535_v18 }
  0xe5   : > { %v548_v24 = vrot.slane %v540_v19, %v491_v59  ;;  %v555_v26 = vrot.slane %v541_v20, %v491_v59 }
  0xe7   : > { %v556_v27 = vcombine.low %v548_v24, %v555_v26 }
  0xe9   : > { %v563_v29 = vrot.slane %v556_v27, %v491_v59 }
  0xeb   : > { %v565_v31 = vsub.f32 %v510_v28, %v563_v29 }
  0xed   : > { %v578_v21 = vrot.slane %v565_v31, %v518_v7  ;;  %v586_v22 = vrot.slane %v565_v31, %v526_v9  ;;  %v574_v23 = vrot.slane %v565_v31, %v514_v5  ;;  %v582_v25 = vrot.slane %v565_v31, %v522_v8 }
  0xef   : > { %v592_v39 = vadd.f32 %v578_v21, %v567_v30  ;;  %v594_v40 = vadd.f32 %v586_v22, %v569_v32  ;;  %v591_v41 = vadd.f32 %v574_v23, %v566_v37  ;;  %v593_v42 = vadd.f32 %v582_v25, %v568_v38 }
  0xf1   : > { %v597_v43 = vpack.c.bf16 %v592_v39, %v592_v39  ;;  %v599_v44 = vpack.c.bf16 %v594_v40, %v594_v40  ;;  %v596_v45 = vpack.c.bf16 %v591_v41, %v591_v41  ;;  %v598_v34 = vpack.c.bf16 %v593_v42, %v593_v42 }
  0xf3   : > { %888 = vmatprep.mubr.bf16.mxu0 %v597_v43  ;;  %928 = vmatprep.mubr.bf16.mxu1 %v599_v44 }
  0xf4   : > { %889 = vmatmul.mubr.bf16.vlgmr.msra.gmra.mxu0 %v596_v45  ;;  %929 = vmatmul.mubr.bf16.vlgmr.msra.gmra.mxu1 %v598_v34 }
 0x1b4   : > { %v1207_v33 = vpop.f32.mrf.mxu0  ;;  %v1229_v35 = vpop.f32.mrf.mxu1 }
 0x1b6   : > { %v1208_v36 = vpop.f32.mrf.mxu0  ;;  %v1230_v46 = vpop.f32.mrf.mxu1 }
 0x1b7   : > { %v1209_v47 = vadd.f32 %v1208_v36, %v1207_v33  ;;  %v1231_v48 = vadd.f32 %v1230_v46, %v1229_v35 }
 0x1b8   : > { %v1210_v50 = vpop.f32.mrf.mxu0  ;;  %v1232_v51 = vpop.f32.mrf.mxu1 }
 0x1b9   : > { %v931_v52 = vadd.f32 %v1231_v48, %v1209_v47  ;;  %941 = sbr.rel (%p1181_p11) target bundleno = 458 (0x1ca), region = 64 }
 0x1ba   : > { %v1211_v53 = vpop.f32.mrf.mxu0  ;;  %v1233_v54 = vpop.f32.mrf.mxu1 }
 0x1bb   : > { %v936_v55 = vadd.f32 %v931_v52, %v595_v49 }
 0x1bd   : > { %937 = vst [vmem:[%s1995_s19] sm:$0xff] %v936_v55 }
 0x1be   : > { %v1182_v57 = vld [vmem:[%s387_s4] ss:$0 sm:$0xff] }
 0x1c4   : > { %v942_v56 = vld [vmem:[%s1995_s19] sm:$0xff] }
 0x1c5   : > { %v950_v58 = vadd.f32 %v1182_v57, %v942_v56 }
 0x1c7   : > { %v951_v59 = vmax.f32 %v950_v58, 0.0 }
 0x1c9   : > { %952 = vst [vmem:[%s1995_s19] sm:$0xff] %v951_v59 }
 0x1ca PF: > { %s2214_s9 = sld [smem:[#allocation20_spill]]  ;;  %s967_s16 = sshll.u32 %s1995_s19, 4  ;;  %s968_s16 = int_to_ptr.vmem [resolvable:$true] %s967_s16 }
 0x1cb   : > { %s2216_s26 = sld [smem:[#allocation26_spill]]  ;;  %s954_s22 = scalar_lea.sflag [#allocation4], %s378_s15 }
 0x1cc   : > { %s2217_s14 = sld [smem:[#allocation31_spill]]  ;;  %s1533_s27 = scalar_lea.vmem %s968_s16, 128 }
 0x1cd   : > { %p1534_p5 = scmp.ne.s32.totalorder %s968_s16, %s1533_s27  ;;  %s1696_s1 = smov [#allocation10]  }
 0x1ce   : > { %s1537_s21 = sshll.u32 %s1696_s1, 4  ;;  %s1538_s21 = int_to_ptr.vmem [resolvable:$false] %s1537_s21 }
 0x1cf   : > { %s1539_s4 = scalar_lea.vmem %s1538_s21, 256  ;;  %p1540_p9 = scmp.lt.s32.totalorder %s968_s16, %s1538_s21 }
 0x1d0   : > { %s1184_s8 = sshll.u32 %s2214_s9, 7  ;;  %p1541_p10 = scmp.lt.s32.totalorder %s1539_s4, %s1533_s27 }
 0x1d1   : > { %p2218_p6 = scmp.ne.s32.totalorder %s2216_s26, 0 }
 0x1d2   : > { %s965_s7 = scalar_lea.hbm %s2217_s14, %s1184_s8  ;;  %p1542_p2 = por %p1541_p10, %p1540_p9 }
 0x1d3   : > { %p1535_p3 = pnand %p1534_p5, %p2218_p6 }
 0x1d5   : > { %p1536_p8 = pneg %p1535_p3 }
 0x1d7   : > { %p1543_p1 = pnand %p1542_p2, %p1536_p8 }
 0x1d9   : > { %1546 = shalt.err (!%p1543_p1)
}
 0x1da   : > { %s1547_s18 = scalar_lea.hbm %s965_s7, 128  ;;  %s1551_s11 = scalar_lea.hbm %s2217_s14, 256 }
 0x1db   : > { %p1548_p13 = scmp.ne.s32.totalorder %s965_s7, %s1547_s18  ;;  %p1552_p12 = scmp.lt.s32.totalorder %s965_s7, %s2217_s14 }
 0x1dc   : > { %p1553_p7 = scmp.lt.s32.totalorder %s1551_s11, %s1547_s18 }
 0x1dd   : > { %p1549_p0 = pnand %p1548_p13, %p2218_p6 }
 0x1de   : > { %p1554_p11 = por %p1553_p7, %p1552_p12 }
 0x1df   : > { %p1550_p4 = pneg %p1549_p0 }
 0x1e1   : > { %p1555_p5 = pnand %p1554_p11, %p1550_p4 }
 0x1e3   : > { %1558 = shalt.err (!%p1555_p5)
}
 0x1e4   : > { %1243 = dma.vmem_to_hbm [thread:$0]  (%p2218_p6), %s968_s16, 128, %s965_s7, %s954_s22  }
 0x1e5 PF: > { %s2219_s12 = sld [smem:[#allocation21_spill]] }
 0x1e6   : > { %s2220_s9 = sld [smem:[#allocation15_spill]] }
 0x1e7   : > { %s2221_s17 = sld [smem:[#allocation27_spill]] }
 0x1eb   : > { %p1263_p3 = scmp.ge.s32.totalorder %s2219_s12, 2 }
 0x1ec   : > { %s979_s8 = sand.u32 1, %s2220_s9  }
 0x1ed   : > { %p2222_p8 = scmp.ne.s32.totalorder %s2221_s17, 0  ;;  %s980_s6 = scalar_lea.sflag [#allocation4], %s979_s8 }
 0x1ef   : > { %p1259_p9 = pnand %p1263_p3, %p2222_p8 }
 0x1f1   : > { %p1260_p10 = pneg %p1259_p9 }
 0x1f3   : > { %1628 = dma.done.wait (%p1260_p10), %s980_s6, 128  }
 0x1f4   : > { %1630 = vsyncadd (%p1260_p10), %s980_s6, 4294967168  ;;  %s27_s6 = sadd.s32 1, %s2219_s12   ;;  %s2224_s18 = sld [smem:[#allocation16_spill]] }
 0x1f5   : > { %p2099_p2 = scmp.ge.s32.totalorder %s27_s6, 6   ;;  %s2225_s21 = sld [smem:[#allocation17_spill]] }
 0x1f6   : > { %s2226_s26 = sld [smem:[#allocation18_spill]]  ;;  %s2229_s19 = smov %s1641_s20 }
 0x1f7   : > { %s2227_s7 = sld [smem:[#allocation24_spill]]  ;;  %s2230_s20 = smov %s1944_s5 }
 0x1f8   : > { %s2228_s16 = sld [smem:[#allocation23_spill]]  ;;  %s2231_s22 = smov %s1653_s23 }
 0x1f9   : > { %s2232_s23 = smov %s1949_s10  ;;  %s2233_s24 = smov %s1661_s25 }
 0x1fa   : > { %s2236_s27 = smov %s1677_s29  ;;  %s2237_s28 = smov %s1681_s30 }
 0x1fb   : > { %s2239_s30 = smov %s2245_s2  ;;  %26 = sbr.rel (!%p2099_p2) target bundleno = 19 (0x13), region = 133 }
 0x1fc   : > { %s2234_s25 = smov %s2226_s26 }
 0x1fd   : > { %s2235_s26 = smov %s2227_s7 }
 0x1fe   : > { %s2238_s29 = smov %s2228_s16 }
 0x200   :  { %985 = vsyncpa [#allocation3], 1 }
 0x201   :  { %987 = vsyncpa [#allocation3 + $0x1], 1 }
 0x202   :  { %988 = vsyncpa [#allocation6], 1 }
 0x203   :  { %990 = vsyncpa [#allocation6 + $0x1], 1 }
 0x204   :  { %991 = vsyncpa [#allocation9], 1 }
 0x205   :  { %993 = vsyncpa [#allocation9 + $0x1], 1 }
 0x206   :  { %994 = vsyncpa [#allocation4], 1 }
 0x207   :  { %996 = vsyncpa [#allocation4 + $0x1], 1 }

</bundles_post_ra>
